<compile_context>
chip_gen: v7x
topology: tpu7x:2x2x1
jax: 0.10.0
libtpu: 0.0.40
codegen_flags: <defaults>
</compile_context>

<pallas_src>
import functools
import math

import jax
import jax.numpy as jnp
import numpy as np
from jax.experimental import pallas as pl
from jax.experimental.pallas import tpu as pltpu


def _round_up(x, m):
    return ((x + m - 1) // m) * m


def _tpu_generation():
    """Best-effort TPU generation (6 for v6e, 7 for v7x, ...). 0 if unknown."""
    try:
        kind = jax.devices()[0].device_kind.lower()
    except Exception:
        return 0
    if "v7" in kind or "tpu7" in kind:
        return 7
    for g in (6, 5, 4, 3, 2):
        if f"v{g}" in kind:
            return g
    return 0


def _vmem_budget_bytes():
    """Per-core VMEM budget, leaving headroom for compiler-internal scratch."""
    cap = None
    try:
        cap = getattr(pltpu.get_tpu_info(), "vmem_capacity_bytes", None)
    except Exception:
        cap = None
    if not cap:
        cap = 64 * 1024 * 1024  # conservative fallback: v7x per-TC VMEM
    return (int(cap) * 3) // 4  # ~48 MiB on v7x, ~96 MiB on v5e/v6e


def _spec(block_shape, index_map, pipeline_mode=None):
    """BlockSpec helper that only passes pipeline_mode when it is set."""
    if pipeline_mode is None:
        return pl.BlockSpec(block_shape, index_map)
    return pl.BlockSpec(block_shape, index_map, pipeline_mode=pipeline_mode)


def coxnnet_kernel(x_ref, w1_ref, b1_ref, w2_ref, b2_ref, o_ref, *, epilogue_dtype):
    # fc1 on the MXU: cast the streamed x tile to bf16 in-kernel (free VPU cast;
    # no wrapper-side cast/pad pass over x), f32 accumulation.
    h = jnp.dot(x_ref[...].astype(jnp.bfloat16), w1_ref[...],
                preferred_element_type=jnp.float32)
    # Bias + tanh.  epilogue_dtype is bf16 on v6e/v7x for small nfeat (the single
    # EUP slot is the binding unit there; bf16 EUP/VPU ~2x), f32 otherwise (v5e).
    t = jnp.tanh((h + b1_ref[...]).astype(epilogue_dtype))
    # Dropout: identity (inference / eval() semantics of nn.Dropout).
    # TODO(synk): training-mode dropout (Bernoulli mask via pltpu.prng_*) not implemented.
    # fc2 (N=1): VPU multiply + cross-lane reduce; padded hidden columns have
    # zero w2 so they contribute nothing.
    out = jnp.sum(t.astype(jnp.float32) * w2_ref[...], axis=-1) + b2_ref[0]
    # Lane-dense store: emit the per-row scalars as a (1, tile_b) row block
    # (unmasked wide vst) instead of a last-dim-1 column block.
    o_ref[...] = out.reshape(1, -1).astype(o_ref.dtype)


def prepare_coxnnet_params(w1, b1, w2, b2, h_pad=None):
    """Transpose / zero-pad / cast PyTorch-layout params for the kernel.

    w1: (H, nfeat)  b1: (H,)  w2: (1, H)  b2: (1,)
    Returns:
      w1_p: bf16 [nfeat, H_pad]   (fc1 weight, pre-transposed, zero-padded)
      b1_p: f32  [1, H_pad]       (padded entries are 0)
      w2_p: f32  [1, H_pad]       (padded entries are 0 -> no contribution)
      b2_p: f32  [1]              (SMEM scalar)
    """
    hidden, nfeat = w1.shape
    if h_pad is None:
        # Keep the hidden dim at 128 lanes (fits every generation's MXU N tiling;
        # no benefit widening to 256 for v6e/v7x since the kernel is HBM-bound).
        h_pad = _round_up(max(hidden, 1), 128)
    pad = h_pad - hidden
    w1_p = jnp.pad(w1.T.astype(jnp.float32), ((0, 0), (0, pad))).astype(jnp.bfloat16)
    b1_p = jnp.pad(b1.astype(jnp.float32), (0, pad)).reshape(1, h_pad)
    w2_p = jnp.pad(w2.reshape(-1).astype(jnp.float32), (0, pad)).reshape(1, h_pad)
    b2_p = b2.astype(jnp.float32).reshape(1)
    return w1_p, b1_p, w2_p, b2_p


def coxnnet_forward(x, w1_p, b1_p, w2_p, b2_p, *, tile_b=None, epilogue_dtype=None):
    """x: [B, nfeat] float; params from prepare_coxnnet_params. Returns [B, 1] f32."""
    B, nfeat = x.shape
    h_pad = w1_p.shape[1]
    x_itemsize = int(jnp.dtype(x.dtype).itemsize)

    vmem_budget = _vmem_budget_bytes()
    w1_bytes = int(w1_p.size) * int(w1_p.dtype.itemsize)
    resident_bytes = w1_bytes + (int(b1_p.size) + int(w2_p.size)) * 4

    # --- batch tile sizing: bytes-per-step driven, VMEM-budget capped ---------
    if tile_b is None:
        # ~2 MiB of x per grid step amortizes the ~0.35 us/step pipeline overhead.
        target = max(128, (2 << 20) // max(nfeat * x_itemsize, 1))
        # Keep >= 2 grid steps when the batch is big enough so "parallel" can
        # shard across both v7x TensorCores.
        if B > 256:
            target = min(target, _round_up(pl.cdiv(B, 2), 128))
        # VMEM cap: up to 3 x-buffers + resident weights + out blocks + headroom.
        avail = vmem_budget - resident_bytes - (4 << 20)
        max_rows = max(128, avail // max(3 * nfeat * x_itemsize + 8, 1))
        tile_b = min(target, max_rows)
    tile_b = max(128, (int(tile_b) // 128) * 128)   # lane-dense out block
    tile_b = min(tile_b, _round_up(B, 128))
    if tile_b >= B:
        tile_b = B                                  # single full block, no masking
    grid_len = pl.cdiv(B, tile_b)

    # --- pipelining depths -----------------------------------------------------
    # Grid-invariant operands: single-buffer once w1 is big enough that default
    # double-buffering wastes meaningful VMEM.
    const_pipe = pl.Buffered(1) if w1_bytes > (2 << 20) else None
    # Deeper x buffering only pays for small per-step blocks on a long grid.
    x_block_bytes = tile_b * nfeat * x_itemsize
    x_pipe = pl.Buffered(3) if (x_block_bytes < (1 << 20) and grid_len >= 4) else None

    # --- epilogue dtype (bf16 EUP/VPU on v6e/v7x in the small-nfeat regime) ----
    if epilogue_dtype is None:
        gen = _tpu_generation()
        epilogue_dtype = jnp.bfloat16 if (gen >= 6 and nfeat <= 512) else jnp.float32

    cost = pl.CostEstimate(
        flops=int(2 * B * nfeat * h_pad + 4 * B * h_pad),
        transcendentals=int(B * h_pad),
        bytes_accessed=int(B * nfeat * x_itemsize + w1_bytes
                           + (int(b1_p.size) + int(w2_p.size) + int(b2_p.size)) * 4
                           + B * 4),
    )

    out_row = pl.pallas_call(
        functools.partial(coxnnet_kernel, epilogue_dtype=epilogue_dtype),
        out_shape=jax.ShapeDtypeStruct((1, B), jnp.float32),
        grid=(grid_len,),
        in_specs=[
            _spec((tile_b, nfeat), lambda i: (i, 0), x_pipe),       # x: streamed
            _spec((nfeat, h_pad), lambda i: (0, 0), const_pipe),    # w1: resident
            _spec((1, h_pad), lambda i: (0, 0), const_pipe),        # b1: resident
            _spec((1, h_pad), lambda i: (0, 0), const_pipe),        # w2 row: resident
            pl.BlockSpec(memory_space=pltpu.MemorySpace.SMEM),      # b2: SMEM scalar
        ],
        out_specs=pl.BlockSpec((1, tile_b), lambda i: (0, i)),      # lane-dense out
        compiler_params=pltpu.CompilerParams(
            dimension_semantics=("parallel",),
            vmem_limit_bytes=int(vmem_budget),
        ),
        cost_estimate=cost,
    )(x, w1_p, b1_p, w2_p, b2_p)

    return out_row.reshape(B, 1)


def xavier_normal(key, shape):
    # nn.init.xavier_normal_ for a Linear weight of shape (out, in)
    fan_out, fan_in = shape
    std = math.sqrt(2.0 / (fan_in + fan_out))
    return std * jax.random.normal(key, shape, dtype=jnp.float32)


if __name__ == "__main__":
    nfeat = 64
    hidden = int(np.ceil(nfeat ** 0.5))  # = 8
    batch = 2

    key = jax.random.PRNGKey(0)
    kx, kw1, kb1, kw2, kb2 = jax.random.split(key, 5)

    # Input (stored dtype streamed directly; no wrapper cast/pad pass).
    x = jax.random.normal(kx, (batch, nfeat), dtype=jnp.float32)

    # Parameters (deterministic init; weights xavier-normal as in init_hidden).
    w1 = xavier_normal(kw1, (hidden, nfeat))          # fc1.weight: (H, nfeat)
    b1 = 0.01 * jax.random.normal(kb1, (hidden,), dtype=jnp.float32)
    w2 = xavier_normal(kw2, (1, hidden))              # fc2.weight: (1, H)
    b2 = 0.01 * jax.random.normal(kb2, (1,), dtype=jnp.float32)

    w1_p, b1_p, w2_p, b2_p = prepare_coxnnet_params(w1, b1, w2, b2)

    out = coxnnet_forward(x, w1_p, b1_p, w2_p, b2_p)
    out = jax.block_until_ready(out)
    assert out.shape == (batch, 1)

    # Pure-JAX reference mirroring the kernel's dtype choices: bf16-quantized
    # x / w1 with f32 accumulation, and (on v6e/v7x) a bf16 tanh epilogue.
    bf16_epi = _tpu_generation() >= 6 and nfeat <= 512
    x_q = x.astype(jnp.bfloat16).astype(jnp.float32)
    w1_q = w1.T.astype(jnp.bfloat16).astype(jnp.float32)
    h_ref = x_q @ w1_q + b1.reshape(1, -1)
    if bf16_epi:
        t_ref = jnp.tanh(h_ref.astype(jnp.bfloat16)).astype(jnp.float32)
        tol = 2e-2  # covers bf16 rounding / tanh-approximation ulp differences
    else:
        t_ref = jnp.tanh(h_ref)
        tol = 1e-4
    ref = jnp.sum(t_ref * w2.reshape(1, -1), axis=-1, keepdims=True) + b2.reshape(1, 1)

    np.testing.assert_allclose(np.asarray(out), np.asarray(ref), rtol=tol, atol=tol)

    print("KERNEL_OK")
</pallas_src>

<mosaic_0001>
module attributes {stable_mosaic.version = 11 : i64} {
  func.func @coxnnet_kernel(%arg0: i32, %arg1: memref<2x64xf32, #tpu.memory_space<vmem>>, %arg2: memref<64x128xbf16, #tpu.memory_space<vmem>>, %arg3: memref<1x128xf32, #tpu.memory_space<vmem>>, %arg4: memref<1x128xf32, #tpu.memory_space<vmem>>, %arg5: memref<1xf32, #tpu.memory_space<smem>>, %arg6: memref<1x2xf32, #tpu.memory_space<vmem>>) attributes {dimension_semantics = [#tpu.dimension_semantics<parallel>], iteration_bounds = array<i64: 1>, scalar_prefetch = 0 : i64, scratch_operands = 0 : i64, tpu.core_type = #tpu.core_type<tc>, window_params = [{transform_indices = @transform_0, window_bounds = array<i64: 2, 64>}, {pipeline_mode = #tpu.pipeline_mode<synchronous>, transform_indices = @transform_1, window_bounds = array<i64: 64, 128>}, {pipeline_mode = #tpu.pipeline_mode<synchronous>, transform_indices = @transform_2, window_bounds = array<i64: 1, 128>}, {pipeline_mode = #tpu.pipeline_mode<synchronous>, transform_indices = @transform_3, window_bounds = array<i64: 1, 128>}, {transform_indices = @transform_4, window_bounds = array<i64: 1>}, {transform_indices = @transform_5, window_bounds = array<i64: 1, 2>}]} {
    %c0 = arith.constant 0 : index
    %c0_0 = arith.constant 0 : index
    %0 = vector.load %arg1[%c0, %c0_0] : memref<2x64xf32, #tpu.memory_space<vmem>>, vector<2x64xf32>
    %1 = arith.truncf %0 : vector<2x64xf32> to vector<2x64xbf16>
    %c0_1 = arith.constant 0 : index
    %c0_2 = arith.constant 0 : index
    %2 = vector.load %arg2[%c0_1, %c0_2] : memref<64x128xbf16, #tpu.memory_space<vmem>>, vector<64x128xbf16>
    %cst = arith.constant dense<0.000000e+00> : vector<2x128xf32>
    %3 = tpu.matmul %1, %2, %cst {dimension_numbers = #tpu.dot_dimension_numbers<[1], [0], [0], [1], [0, 0, 1, 1], [], []>} : vector<2x64xbf16>, vector<64x128xbf16>, vector<2x128xf32> -> vector<2x128xf32>
    %c0_3 = arith.constant 0 : index
    %c0_4 = arith.constant 0 : index
    %4 = vector.load %arg3[%c0_3, %c0_4] : memref<1x128xf32, #tpu.memory_space<vmem>>, vector<1x128xf32>
    %5 = vector.broadcast %4 : vector<1x128xf32> to vector<2x128xf32>
    %6 = arith.addf %3, %5 : vector<2x128xf32>
    %7 = math.tanh %6 : vector<2x128xf32>
    %c0_5 = arith.constant 0 : index
    %c0_6 = arith.constant 0 : index
    %8 = vector.load %arg4[%c0_5, %c0_6] : memref<1x128xf32, #tpu.memory_space<vmem>>, vector<1x128xf32>
    %9 = vector.broadcast %8 : vector<1x128xf32> to vector<2x128xf32>
    %10 = arith.mulf %7, %9 : vector<2x128xf32>
    %cst_7 = arith.constant dense<0.000000e+00> : vector<2xf32>
    %11 = vector.multi_reduction <add>, %10, %cst_7 [1] : vector<2x128xf32> to vector<2xf32>
    %c0_8 = arith.constant 0 : index
    %12 = memref.load %arg5[%c0_8] : memref<1xf32, #tpu.memory_space<smem>>
    %13 = vector.broadcast %12 : f32 to vector<2xf32>
    %14 = arith.addf %11, %13 : vector<2xf32>
    %15 = vector.shape_cast %14 : vector<2xf32> to vector<1x2xf32>
    %c0_9 = arith.constant 0 : index
    %c0_10 = arith.constant 0 : index
    %16 = vector.load %arg6[%c0_9, %c0_10] : memref<1x2xf32, #tpu.memory_space<vmem>>, vector<1x2xf32>
    tpu.vector_store %arg6[%c0_9, %c0_10], %15 {strides = array<i32>} : memref<1x2xf32, #tpu.memory_space<vmem>>, vector<1x2xf32>,
    return
  }
  func.func @transform_0(%arg0: i32) -> (i32, i32) {
    %c0_i32 = arith.constant 0 : i32
    %c0_i32_0 = arith.constant 0 : i32
    return %arg0, %c0_i32 : i32, i32
  }
  func.func @transform_1(%arg0: i32) -> (i32, i32) {
    %c0_i32 = arith.constant 0 : i32
    %c0_i32_0 = arith.constant 0 : i32
    %c0_i32_1 = arith.constant 0 : i32
    return %c0_i32, %c0_i32_0 : i32, i32
  }
  func.func @transform_2(%arg0: i32) -> (i32, i32) {
    %c0_i32 = arith.constant 0 : i32
    %c0_i32_0 = arith.constant 0 : i32
    %c0_i32_1 = arith.constant 0 : i32
    return %c0_i32, %c0_i32_0 : i32, i32
  }
  func.func @transform_3(%arg0: i32) -> (i32, i32) {
    %c0_i32 = arith.constant 0 : i32
    %c0_i32_0 = arith.constant 0 : i32
    %c0_i32_1 = arith.constant 0 : i32
    return %c0_i32, %c0_i32_0 : i32, i32
  }
  func.func @transform_4(%arg0: i32) -> i32 {
    %c0_i32 = arith.constant 0 : i32
    %c0_i32_0 = arith.constant 0 : i32
    return %c0_i32 : i32
  }
  func.func @transform_5(%arg0: i32) -> (i32, i32) {
    %c0_i32 = arith.constant 0 : i32
    %c0_i32_0 = arith.constant 0 : i32
    return %c0_i32, %arg0 : i32, i32
  }
}

</mosaic_0001>

<bundles_post_ra>
// kernel: tpu_custom_call.1
= control target key start
LH: loop header
LB: loop body
LE: loop exit
PB: predicated region body
PF: predicated region fallthrough
CT: control target
= control target key end

     0   :  { %11 = vsyncpa [#allocation4], 0  ;;  %s319_s0 = inlined_call_operand.vmem [shape: f32[2,64], index: 0, kind: input, shape index: {}]   ;;  %s320_s1 = inlined_call_operand.hbm [shape: bf16[64,128], index: 1, kind: input, shape index: {}]   ;;  %s321_s2 = inlined_call_operand.vmem [shape: f32[1,128], index: 2, kind: input, shape index: {}]   ;;  %s322_s3 = inlined_call_operand.vmem [shape: f32[1,128], index: 3, kind: input, shape index: {}]   ;;  %s323_s4 = inlined_call_operand.<no memory space> [shape: f32[1], index: 4, kind: input, shape index: {}]   ;;  %s324_s5 = inlined_call_operand.hbm [shape: f32[1,2], index: 5, kind: output, shape index: {}]  }
   0x1   :  { %12 = vsyncpa [#allocation5], 0  ;;  %s247_s18 = smov [#allocation3]   ;;  %s199_s22 = scalar_lea.hbm %s320_s1, 512 }
   0x2   :  { %s20_s19 = sshll.u32 %s247_s18, 4  ;;  %p200_p0 = scmp.ne.s32.totalorder %s320_s1, %s199_s22  ;;  %s21_s19 = int_to_ptr.vmem [resolvable:$true] %s20_s19 }
   0x3   :  { %p203_p1 = scmp.lt.u32.totalorder %s199_s22, %s320_s1 }
   0x5   :  { %p205_p2 = pnand %p203_p1, %p200_p0 }
   0x7   :  { %208 = shalt.err (!%p205_p2)
}
   0x8   :  { %s209_s27 = scalar_lea.vmem %s21_s19, 512  ;;  %p214_p4 = scmp.lt.s32.totalorder %s21_s19, %s21_s19 }
   0x9   :  { %p210_p3 = scmp.ne.s32.totalorder %s21_s19, %s209_s27  ;;  %p215_p5 = scmp.lt.s32.totalorder %s209_s27, %s209_s27 }
   0xb   :  { %p216_p6 = por %p215_p5, %p214_p4 }
   0xd   :  { %p217_p7 = pnand %p216_p6, %p210_p3 }
   0xf   :  { %220 = shalt.err (!%p217_p7)
}
  0x10   :  { %s248_s28 = smov 64   ;;  %s249_s29 = smov 4  }
  0x11   :  { %26 = dma.hbm_to_vmem [thread:$0]  %s320_s1, 512, %s21_s19, [#allocation4], %s248_s28, %s248_s28, %s249_s29  }
  0x12   :  { %243 = dma.done.wait [#allocation4], 512  }
  0x13   :  { %244 = vsyncadd [#allocation4], 4294966784  ;;  %v250_v0 = vmov 0.0   ;;  %vm251_vm0 = vmmov 0   ;;  %v193_v1 = vld [vmem:[#allocation3] sm:$0xff]   ;;  %v194_v2 = vld [vmem:[#allocation3 + $0x8] sm:$0xff]   ;;  %v139_v17 = vlaneseq  ;;  %v136_v20 = vstv %s323_s4 }
  0x14   :  { %175 = vmatprep.subr.bf16.mxu0 %v250_v0  ;;  %183 = vmatprep.mubr.msk.bf16.mxu0 %vm251_vm0, %v250_v0  ;;  %v195_v3 = vld [vmem:[#allocation3 + $0x10] sm:$0xff]   ;;  %v196_v4 = vld [vmem:[#allocation3 + $0x18] sm:$0xff]   ;;  %v37_v5 = vld [vmem:[%s319_s0] sm:$0x3]  ;;  %vm78_vm1 = vcmask 523264   ;;  %vm131_vm2 = vcmask 1041408  }
  0x15   :  { %176 = vmatpush3.bf16.msra.mxu0 %v193_v1  ;;  %v38_v6 = vpack.c.bf16 %v37_v5, %v37_v5  ;;  %v163_v7 = vld [vmem:[%s321_s2] ss:$0 sm:$0xff]  ;;  %v140_v18 = vand.u32 127, %v139_v17  ;;  %v142_v19 = vshrl.u32 %v139_v17, 7  ;;  %s252_s12 = smov [#allocation6]   ;;  %vm146_vm3 = vcmask 8192  }
  0x16   :  { %177 = vmatprep.subr.bf16.mxu0 %v250_v0  ;;  %v169_v13 = vld [vmem:[%s322_s3] ss:$0 sm:$0xff]  ;;  %s154_s13 = sshll.u32 %s252_s12, 4  ;;  %s155_s13 = int_to_ptr.vmem [resolvable:$true] %s154_s13 }
  0x17   :  { %v143_v21 = vsub.s32 %v140_v18, %v142_v19  ;;  %s221_s3 = scalar_lea.vmem %s155_s13, 16  ;;  %s225_s14 = scalar_lea.vmem %s155_s13, 32 }
  0x18   :  { %p222_p8 = scmp.ne.s32.totalorder %s155_s13, %s221_s3  ;;  %p226_p9 = scmp.lt.s32.totalorder %s155_s13, %s155_s13 }
  0x19   :  { %178 = vmatpush3.bf16.msra.mxu0 %v194_v2  ;;  %p227_p10 = scmp.lt.s32.totalorder %s225_s14, %s221_s3 }
  0x1a   :  { %179 = vmatprep.subr.bf16.mxu0 %v250_v0 }
  0x1b   :  { %p228_p11 = por %p227_p10, %p226_p9 }
  0x1d   :  { %180 = vmatpush3.bf16.msra.mxu0 %v195_v3  ;;  %p229_p12 = pnand %p228_p11, %p222_p8 }
  0x1e   :  { %181 = vmatprep.subr.bf16.mxu0 %v250_v0 }
  0x21   :  { %182 = vmatpush3.bf16.msra.mxu0 %v196_v4 }
  0x24   :  { %184 = vmatmul.mubr.msk.bf16.vlgmr.msra.gmra.mrb[0].mxu0 %vm78_vm1, %v38_v6 }
  0xf7   :  { %v116_v8 = vpop.f32.mrb[0].mxu0 }
  0xf8   :  { %v117_v9 = vadd.f32 %v163_v7, %v116_v8  ;;  %v185_v10 = vpop.f32.mrb[1].mxu0 }
  0xf9   :  { %v119_v11 = vpop.f32.mrb[2].mxu0 }
  0xfa   :  { %197 = vtanh.f32 %v117_v9  ;;  %v186_v12 = vpop.f32.mrb[3].mxu0 }
 0x104   :  { %v198_v14 = vpop.eup %197 }
 0x105   :  { %v130_v15 = vmul.f32 %v198_v14, %v169_v13 }
 0x107   :  { %v132_v16 = vsel %vm131_vm2, %v130_v15, 0.0 }
 0x108   :  { %133 = vadd.xlane.f32.xlu0 %v132_v16 }
 0x195   :  { %v134_v22 = vpop.xlane.xlu0 %133 }
 0x196   :  { %v137_v23 = vadd.f32 %v136_v20, %v134_v22 }
 0x198   :  { %v144_v24 = vrot.slane %v137_v23, %v143_v21 }
 0x19a   :  { %147 = vst.msk [vmem:[#allocation6] sm:$0x1] %vm146_vm3, %v144_v24 }
 0x19b   :  { %232 = shalt.err (!%p229_p12)
}
 0x19c   :  { %s233_s4 = scalar_lea.hbm %s324_s5, 16 }
 0x19d   :  { %p234_p13 = scmp.ne.s32.totalorder %s324_s5, %s233_s4  ;;  %p237_p0 = scmp.lt.u32.totalorder %s233_s4, %s324_s5 }
 0x19f   :  { %p239_p1 = pnand %p237_p0, %p234_p13 }
 0x1a1   :  { %242 = shalt.err (!%p239_p1)
}
 0x1a2   :  { %157 = dma.vmem_to_hbm [thread:$0]  %s155_s13, 16, %s324_s5, [#allocation5]  }
 0x1a3   :  { %245 = dma.done.wait [#allocation5], 16  }
 0x1a4   :  { %246 = vsyncadd [#allocation5], 4294967280 }
 0x1a5   :  { %161 = vsyncpa [#allocation4], 1 }
 0x1a6   :  { %162 = vsyncpa [#allocation5], 1 }

</bundles_post_ra>
